<compile_context>
chip_gen: v6e
topology: v6e:2x2x1
jax: 0.10.0
libtpu: 0.0.40
codegen_flags: <defaults>
</compile_context>

<pallas_src>
import functools

import jax
import jax.numpy as jnp
from jax.experimental import pallas as pl
from jax.experimental.pallas import tpu as pltpu

_ROWS = 128  # tile-row granularity (keeps blocks (8,128)-friendly)


def _hard_simple_vfe_kernel(x_ref, n_ref, o_ref, *, num_p, c_in, c_out):
    # x_ref: (TN, P*C_in)  per-voxel point features, native layout
    # n_ref: (TN, 1)       int32 point counts
    # o_ref: (TN, C)       per-voxel mean
    acc = x_ref[:, 0:c_out].astype(jnp.float32)
    for p in range(1, num_p):
        base = p * c_in
        acc = acc + x_ref[:, base:base + c_out].astype(jnp.float32)
    # Clamp guards garbage lanes in the ragged final block (rows are masked on
    # the output store anyway); real hard voxels always have n >= 1.
    n = jnp.maximum(n_ref[...], 1).astype(jnp.float32)  # (TN, 1), broadcasts over C
    o_ref[...] = (acc / n).astype(o_ref.dtype)


def hard_simple_vfe(features, num_points, coors=None, *, num_features=None,
                    tile_n=8192, vmem_budget_bytes=24 * 1024 * 1024):
    """Mean of points inside each voxel (HardSimpleVFE forward).

    Args:
      features:   (N, P, C_in) per-voxel point features (padding rows zeroed).
      num_points: (N,) int number of valid points per voxel (>= 1).
      coors:      voxel coordinates, unused by the forward pass.
      num_features: number of leading features to average (default: all).
      tile_n:     requested voxels per grid step; clamped by the VMEM budget and
                  so that the grid has >= 2 steps when N allows.
      vmem_budget_bytes: budget for the double-buffered block windows.  Keep
                  <= ~24 MiB if targeting v7x (64 MiB physical VMEM).

    Returns:
      (N, num_features) mean of points per voxel, dtype of `features`.
    """
    del coors  # unused by the forward pass
    N, P, C_in = features.shape
    C = C_in if num_features is None else min(num_features, C_in)
    dtype = features.dtype

    # Free layout plumbing: contiguous collapses only, no HBM copies.
    x2d = features.reshape(N, P * C_in)
    npts = num_points.reshape(N, 1)  # stays integer; cast to f32 in-kernel

    # --- tile sizing ---------------------------------------------------------
    def _row_pad_bytes(width, itemsize):
        # per-row VMEM footprint (lane dim padded to a multiple of 128)
        return pl.cdiv(width, 128) * 128 * itemsize

    itemsize = dtype.itemsize
    row_bytes = 2 * (_row_pad_bytes(P * C_in, itemsize)          # input (x2 buffers)
                     + _row_pad_bytes(C, itemsize)               # output
                     + _row_pad_bytes(1, npts.dtype.itemsize))   # counts

    half_rows = pl.cdiv(pl.cdiv(N, 2), _ROWS) * _ROWS            # >= 2 grid steps when N > 128
    vmem_rows = max(_ROWS, (vmem_budget_bytes // row_bytes) // _ROWS * _ROWS)
    tn = max(_ROWS, min((int(tile_n) // _ROWS) * _ROWS, half_rows, vmem_rows))
    grid_n = pl.cdiv(N, tn)

    vmem_limit = max(int(row_bytes * tn) + (8 << 20), 16 << 20)  # buffers + headroom

    kernel = functools.partial(_hard_simple_vfe_kernel,
                               num_p=P, c_in=C_in, c_out=C)

    out = pl.pallas_call(
        kernel,
        out_shape=jax.ShapeDtypeStruct((N, C), dtype),
        grid_spec=pltpu.PrefetchScalarGridSpec(
            num_scalar_prefetch=0,
            grid=(grid_n,),
            in_specs=[
                pl.BlockSpec((tn, P * C_in), lambda i: (i, 0)),
                pl.BlockSpec((tn, 1), lambda i: (i, 0)),
            ],
            out_specs=pl.BlockSpec((tn, C), lambda i: (i, 0)),
        ),
        compiler_params=pltpu.CompilerParams(
            dimension_semantics=("parallel",),
            vmem_limit_bytes=vmem_limit,
        ),
    )(x2d, npts)

    return out  # already (N, C) in native layout; nothing to slice or transpose


def _reference(features, num_points, num_features):
    s = jnp.sum(features[:, :, :num_features].astype(jnp.float32), axis=1)
    n = num_points.astype(jnp.float32).reshape(-1, 1)
    return (s / n).astype(features.dtype)


def _make_case(key, n_voxels, max_points, n_feat):
    k1, k2 = jax.random.split(key, 2)
    feats = jax.random.normal(k1, (n_voxels, max_points, n_feat), dtype=jnp.float32)
    npts = jax.random.randint(k2, (n_voxels,), minval=1, maxval=max_points + 1,
                              dtype=jnp.int32)
    # zero the padding points (hard-voxelization contract assumed by the module)
    point_idx = jnp.arange(max_points)[None, :, None]
    feats = jnp.where(point_idx < npts[:, None, None], feats, 0.0)
    coors = jnp.zeros((n_voxels, 4), dtype=jnp.int32)
    return feats, npts, coors


if __name__ == "__main__":
    key = jax.random.PRNGKey(0)
    k_a, k_b = jax.random.split(key, 2)

    # Case 1: standard config (C_in == num_features == 4), small tile so the
    # multi-block grid + ragged final block paths are exercised.
    feats, npts, coors = _make_case(k_a, n_voxels=300, max_points=8, n_feat=4)
    out = hard_simple_vfe(feats, npts, coors, num_features=4, tile_n=128)
    out = jax.block_until_ready(out)
    ref = _reference(feats, npts, 4)
    assert out.shape == (300, 4) and out.dtype == feats.dtype
    assert jnp.allclose(out, ref, atol=1e-5, rtol=1e-5), "case1 mismatch vs reference"

    # Case 2: num_features < C_in (in-kernel feature slice) with default tiling
    # (tile is auto-clamped so both grid steps have work).
    feats2, npts2, coors2 = _make_case(k_b, n_voxels=260, max_points=5, n_feat=5)
    out2 = hard_simple_vfe(feats2, npts2, coors2, num_features=4)
    out2 = jax.block_until_ready(out2)
    ref2 = _reference(feats2, npts2, 4)
    assert out2.shape == (260, 4) and out2.dtype == feats2.dtype
    assert jnp.allclose(out2, ref2, atol=1e-5, rtol=1e-5), "case2 mismatch vs reference"

    print("KERNEL_OK")
</pallas_src>

<mosaic_0001>
module attributes {stable_mosaic.version = 11 : i64} {
  func.func @_hard_simple_vfe_kernel(%arg0: i32, %arg1: memref<128x32xf32, #tpu.memory_space<vmem>>, %arg2: memref<128x1xi32, #tpu.memory_space<vmem>>, %arg3: memref<128x4xf32, #tpu.memory_space<vmem>>) attributes {dimension_semantics = [#tpu.dimension_semantics<parallel>], iteration_bounds = array<i64: 3>, scalar_prefetch = 0 : i64, scratch_operands = 0 : i64, tpu.core_type = #tpu.core_type<tc>, window_params = [{transform_indices = @transform_0, window_bounds = array<i64: 128, 32>}, {transform_indices = @transform_1, window_bounds = array<i64: 128, 1>}, {transform_indices = @transform_2, window_bounds = array<i64: 128, 4>}]} {
    %c0 = arith.constant 0 : index
    %c0_0 = arith.constant 0 : index
    %0 = vector.load %arg1[%c0, %c0_0] : memref<128x32xf32, #tpu.memory_space<vmem>>, vector<128x4xf32>
    %c0_1 = arith.constant 0 : index
    %c4 = arith.constant 4 : index
    %1 = vector.load %arg1[%c0_1, %c4] : memref<128x32xf32, #tpu.memory_space<vmem>>, vector<128x4xf32>
    %2 = arith.addf %0, %1 : vector<128x4xf32>
    %c0_2 = arith.constant 0 : index
    %c8 = arith.constant 8 : index
    %3 = vector.load %arg1[%c0_2, %c8] : memref<128x32xf32, #tpu.memory_space<vmem>>, vector<128x4xf32>
    %4 = arith.addf %2, %3 : vector<128x4xf32>
    %c0_3 = arith.constant 0 : index
    %c12 = arith.constant 12 : index
    %5 = vector.load %arg1[%c0_3, %c12] : memref<128x32xf32, #tpu.memory_space<vmem>>, vector<128x4xf32>
    %6 = arith.addf %4, %5 : vector<128x4xf32>
    %c0_4 = arith.constant 0 : index
    %c16 = arith.constant 16 : index
    %7 = vector.load %arg1[%c0_4, %c16] : memref<128x32xf32, #tpu.memory_space<vmem>>, vector<128x4xf32>
    %8 = arith.addf %6, %7 : vector<128x4xf32>
    %c0_5 = arith.constant 0 : index
    %c20 = arith.constant 20 : index
    %9 = vector.load %arg1[%c0_5, %c20] : memref<128x32xf32, #tpu.memory_space<vmem>>, vector<128x4xf32>
    %10 = arith.addf %8, %9 : vector<128x4xf32>
    %c0_6 = arith.constant 0 : index
    %c24 = arith.constant 24 : index
    %11 = vector.load %arg1[%c0_6, %c24] : memref<128x32xf32, #tpu.memory_space<vmem>>, vector<128x4xf32>
    %12 = arith.addf %10, %11 : vector<128x4xf32>
    %c0_7 = arith.constant 0 : index
    %c28 = arith.constant 28 : index
    %13 = vector.load %arg1[%c0_7, %c28] : memref<128x32xf32, #tpu.memory_space<vmem>>, vector<128x4xf32>
    %14 = arith.addf %12, %13 : vector<128x4xf32>
    %c0_8 = arith.constant 0 : index
    %c0_9 = arith.constant 0 : index
    %15 = vector.load %arg2[%c0_8, %c0_9] : memref<128x1xi32, #tpu.memory_space<vmem>>, vector<128x1xi32>
    %c1_i32 = arith.constant 1 : i32
    %16 = vector.broadcast %c1_i32 : i32 to vector<128x1xi32>
    %17 = arith.maxsi %15, %16 : vector<128x1xi32>
    %18 = arith.sitofp %17 : vector<128x1xi32> to vector<128x1xf32>
    %19 = vector.broadcast %18 : vector<128x1xf32> to vector<128x4xf32>
    %20 = arith.divf %14, %19 : vector<128x4xf32>
    %c0_10 = arith.constant 0 : index
    %c0_11 = arith.constant 0 : index
    %21 = vector.load %arg3[%c0_10, %c0_11] : memref<128x4xf32, #tpu.memory_space<vmem>>, vector<128x4xf32>
    tpu.vector_store %arg3[%c0_10, %c0_11], %20 {strides = array<i32>} : memref<128x4xf32, #tpu.memory_space<vmem>>, vector<128x4xf32>,
    return
  }
  func.func @transform_0(%arg0: i32) -> (i32, i32) {
    %c0_i32 = arith.constant 0 : i32
    %c0_i32_0 = arith.constant 0 : i32
    return %arg0, %c0_i32 : i32, i32
  }
  func.func @transform_1(%arg0: i32) -> (i32, i32) {
    %c0_i32 = arith.constant 0 : i32
    %c0_i32_0 = arith.constant 0 : i32
    return %arg0, %c0_i32 : i32, i32
  }
  func.func @transform_2(%arg0: i32) -> (i32, i32) {
    %c0_i32 = arith.constant 0 : i32
    %c0_i32_0 = arith.constant 0 : i32
    return %arg0, %c0_i32 : i32, i32
  }
}

</mosaic_0001>

<bundles_post_ra>
// kernel: tpu_custom_call.1
= control target key start
LH: loop header
LB: loop body
LE: loop exit
PB: predicated region body
PF: predicated region fallthrough
CT: control target
= control target key end

     0   :  { %s1438_s9 = smov 0   ;;  %s1440_s10 = smov 0   ;;  %s2097_s0 = inlined_call_operand.vmem [shape: f32[300,32], index: 0, kind: input, shape index: {}]   ;;  %s2098_s1 = inlined_call_operand.vmem [shape: s32[300,1], index: 1, kind: input, shape index: {}]   ;;  %s2099_s2 = inlined_call_operand.vmem [shape: f32[300,4], index: 2, kind: output, shape index: {}]  }
   0x1   :  { %s1442_s11 = smov 0  }
   0x2 LB: > { %s1451_s12 = sadd.s32 4294967295, %s1381_s11   ;;  %s1453_s13 = sadd.s32 1, %s1381_s11   ;;  %s1381_s11 = sphi %s1442_s11, %s2144_s11   ;;  %s1377_s10 = sphi %s1440_s10, %s2143_s10   ;;  %s1373_s9 = sphi %s1438_s9, %s2142_s9  }
   0x3   : > { %s68_s14 = ssub.s32 %s1381_s11, %s1453_s13  ;;  %s71_s15 = sadd.s32 1, %s1377_s10 }
   0x4   : > { %p69_p0 = scmp.eq.s32.totalorder %s68_s14, 0  ;;  %p81_p1 = scmp.ne.s32.totalorder %s1377_s10, %s1373_s9 }
   0x5   : > { %p82_p2 = scmp.eq.s32.totalorder %s1451_s12, 2  ;;  %p1171_p3 = scmp.ge.s32.totalorder %s1381_s11, 1 }
   0x6   : > { %s1461_s16 = scalar_select %p69_p0, %s1377_s10, %s71_s15  }
   0x7   : > { %p1463_p4 = por %p82_p2, %p81_p1  ;;  %p140_p5 = scmp.lt.s32.totalorder %s1381_s11, 4 }
   0x9   : > { %p141_p6 = pnand %p1171_p3, %p140_p5 }
   0xb   : > { %144 = sbr.rel (%p141_p6) target bundleno = 446 (0x1be), region = 28 }
  0x10   : > { %s1468_s18 = sshll.u32 %s1451_s12, 4  ;;  %s1415_s24 = smov 124   ;;  %v1418_v16 = vmov 0  }
  0x11   : > { %p179_p7 = scmp.lt.s32.totalorder %s1468_s18, 37  ;;  %s1416_s25 = smov 120   ;;  %1293 = vset.pattern.permute.xlu1 %v1418_v16  ;;  %1294 = vset.pattern.permute.xlu0 %v1418_v16 }
  0x12   : > { %s1417_s26 = smov 116   ;;  %s1419_s27 = smov 112  }
  0x13   : > { %s1472_s19 = scalar_select %p179_p7, %s1468_s18, 37 }
  0x14   : > { %s1420_s28 = smov 108   ;;  %s1421_s29 = smov 104  }
  0x15   : > { %s1174_s20 = sshll.u32 %s1472_s19, 3  ;;  %s1422_s30 = smov 100  }
  0x16   : > { %s1480_s23 = scalar_lea.vmem %s2097_s0, %s1174_s20  ;;  %s1711_s5 = scalar_lea.vmem %s2098_s1, %s1174_s20 }
  0x17   : > { %v1483_v0 = vld [vmem:[%s1480_s23 + $0x10] sm:$0xff]  ;;  %v1486_v1 = vld [vmem:[%s1480_s23] sm:$0xff]  ;;  %v1491_v2 = vld [vmem:[%s1480_s23 + $0x18] sm:$0xff]  ;;  %s171_s6 = sand.u32 1, %s1373_s9   ;;  %s888_s9 = ssub.s32 (%p1463_p4), 38, %s1468_s18 }
  0x18   : > { %243 = vrot.lane.b32.xlu1 %v1483_v0, %s1415_s24  ;;  %239 = vrot.lane.b32.xlu0 %v1486_v1, %s1415_s24  ;;  %v1494_v3 = vld [vmem:[%s1480_s23 + $0x8] sm:$0xff]  ;;  %v1502_v5 = vld [vmem:[%s1480_s23 + $0x20] sm:$0xff]  ;;  %s1172_s7 = sshll.u32 %s171_s6, 7  ;;  %s1194_s11 = sshll.u32 (%p1463_p4), %s1451_s12, 7 }
  0x19   : > { %v1499_v4 = vld [vmem:[%s1480_s23 + $0x28] sm:$0xff]  ;;  %v1507_v6 = vld [vmem:[%s1480_s23 + $0x38] sm:$0xff]  ;;  %v1510_v7 = vld [vmem:[%s1480_s23 + $0x30] sm:$0xff]  ;;  %s1937_s8 = scalar_lea.vmem [#allocation2], %s1172_s7   ;;  %p889_p8 = scmp.lt.s32.totalorder (%p1463_p4), %s888_s9, 16 }
  0x1a   : > { %v1515_v8 = vld [vmem:[%s1480_s23 + $0x48] sm:$0xff]  ;;  %v1518_v9 = vld [vmem:[%s1480_s23 + $0x40] sm:$0xff]  ;;  %v1523_v10 = vld [vmem:[%s1480_s23 + $0x58] sm:$0xff]  ;;  %s2004_s19 = scalar_lea.vmem (%p1463_p4), %s2099_s2, %s1194_s11  }
  0x1b   : > { %v1526_v11 = vld [vmem:[%s1480_s23 + $0x50] sm:$0xff]  ;;  %v1531_v12 = vld [vmem:[%s1480_s23 + $0x68] sm:$0xff]  ;;  %v1534_v13 = vld [vmem:[%s1480_s23 + $0x60] sm:$0xff] }
  0x1c   : > { %245 = vrot.lane.b32.xlu1 %v1491_v2, %s1415_s24  ;;  %241 = vrot.lane.b32.xlu0 %v1494_v3, %s1415_s24  ;;  %2107 = vst [vmem:[#allocation3_spill] sm:$0xff] %v1531_v12  ;;  %2108 = vst [vmem:[#allocation4_spill] sm:$0xff] %v1534_v13  ;;  %v1539_v14 = vld [vmem:[%s1480_s23 + $0x78] sm:$0xff]  ;;  %v1542_v15 = vld [vmem:[%s1480_s23 + $0x70] sm:$0xff] }
  0x1d   : > { %2109 = vst [vmem:[#allocation5_spill] sm:$0xff] %v1539_v14  ;;  %2110 = vst [vmem:[#allocation6_spill] sm:$0xff] %v1542_v15  ;;  %v687_v59 = vld [vmem:[%s1711_s5] sm:$0xff]  ;;  %v689_v62 = vld [vmem:[%s1711_s5 + $0x10] sm:$0xff] }
  0x1e   : > { %vm703_vm0 = vcmp.gt.s32.totalorder %v687_v59, 1  ;;  %v688_v63 = vld [vmem:[%s1711_s5 + $0x8] sm:$0xff]  ;;  %v690_v16 = vld [vmem:[%s1711_s5 + $0x18] sm:$0xff]  ;;  %vm707_vm1 = vcmp.gt.s32.totalorder %v689_v62, 1 }
  0x1f   : > { %vm705_vm2 = vcmp.gt.s32.totalorder %v688_v63, 1  ;;  %vm709_vm3 = vcmp.gt.s32.totalorder %v690_v16, 1 }
  0x20   : > { %249 = vrot.lane.b32.xlu1 %v1499_v4, %s1415_s24  ;;  %247 = vrot.lane.b32.xlu0 %v1502_v5, %s1415_s24 }
  0x24   : > { %253 = vrot.lane.b32.xlu1 %v1507_v6, %s1415_s24  ;;  %251 = vrot.lane.b32.xlu0 %v1510_v7, %s1415_s24 }
  0x28   : > { %257 = vrot.lane.b32.xlu1 %v1515_v8, %s1415_s24  ;;  %255 = vrot.lane.b32.xlu0 %v1518_v9, %s1415_s24 }
  0x2c   : > { %261 = vrot.lane.b32.xlu1 %v1523_v10, %s1415_s24  ;;  %259 = vrot.lane.b32.xlu0 %v1526_v11, %s1415_s24 }
  0x30   : > { %265 = vrot.lane.b32.xlu1 %v1531_v12, %s1415_s24  ;;  %263 = vrot.lane.b32.xlu0 %v1534_v13, %s1415_s24 }
  0x34   : > { %269 = vrot.lane.b32.xlu1 %v1539_v14, %s1415_s24  ;;  %267 = vrot.lane.b32.xlu0 %v1542_v15, %s1415_s24 }
  0x38   : > { %305 = vrot.lane.b32.xlu1 %v1494_v3, %s1416_s25  ;;  %303 = vrot.lane.b32.xlu0 %v1486_v1, %s1416_s25 }
  0x3c   : > { %309 = vrot.lane.b32.xlu1 %v1491_v2, %s1416_s25  ;;  %307 = vrot.lane.b32.xlu0 %v1483_v0, %s1416_s25 }
  0x40   : > { %313 = vrot.lane.b32.xlu1 %v1499_v4, %s1416_s25  ;;  %311 = vrot.lane.b32.xlu0 %v1502_v5, %s1416_s25 }
  0x44   : > { %317 = vrot.lane.b32.xlu1 %v1507_v6, %s1416_s25  ;;  %315 = vrot.lane.b32.xlu0 %v1510_v7, %s1416_s25 }
  0x48   : > { %321 = vrot.lane.b32.xlu1 %v1515_v8, %s1416_s25  ;;  %319 = vrot.lane.b32.xlu0 %v1518_v9, %s1416_s25 }
  0x4c   : > { %325 = vrot.lane.b32.xlu1 %v1523_v10, %s1416_s25  ;;  %323 = vrot.lane.b32.xlu0 %v1526_v11, %s1416_s25 }
  0x50   : > { %329 = vrot.lane.b32.xlu1 %v1531_v12, %s1416_s25  ;;  %327 = vrot.lane.b32.xlu0 %v1534_v13, %s1416_s25 }
  0x54   : > { %333 = vrot.lane.b32.xlu1 %v1539_v14, %s1416_s25  ;;  %331 = vrot.lane.b32.xlu0 %v1542_v15, %s1416_s25 }
  0x58   : > { %369 = vrot.lane.b32.xlu1 %v1494_v3, %s1417_s26  ;;  %367 = vrot.lane.b32.xlu0 %v1486_v1, %s1417_s26 }
  0x5c   : > { %373 = vrot.lane.b32.xlu1 %v1491_v2, %s1417_s26  ;;  %371 = vrot.lane.b32.xlu0 %v1483_v0, %s1417_s26 }
  0x60   : > { %377 = vrot.lane.b32.xlu1 %v1499_v4, %s1417_s26  ;;  %375 = vrot.lane.b32.xlu0 %v1502_v5, %s1417_s26 }
  0x64   : > { %381 = vrot.lane.b32.xlu1 %v1507_v6, %s1417_s26  ;;  %379 = vrot.lane.b32.xlu0 %v1510_v7, %s1417_s26 }
  0x68   : > { %385 = vrot.lane.b32.xlu1 %v1515_v8, %s1417_s26  ;;  %383 = vrot.lane.b32.xlu0 %v1518_v9, %s1417_s26 }
  0x6c   : > { %389 = vrot.lane.b32.xlu1 %v1523_v10, %s1417_s26  ;;  %387 = vrot.lane.b32.xlu0 %v1526_v11, %s1417_s26 }
  0x70   : > { %393 = vrot.lane.b32.xlu1 %v1531_v12, %s1417_s26  ;;  %391 = vrot.lane.b32.xlu0 %v1534_v13, %s1417_s26 }
  0x74   : > { %397 = vrot.lane.b32.xlu1 %v1539_v14, %s1417_s26  ;;  %395 = vrot.lane.b32.xlu0 %v1542_v15, %s1417_s26 }
  0x78   : > { %433 = vrot.lane.b32.xlu1 %v1494_v3, %s1419_s27  ;;  %431 = vrot.lane.b32.xlu0 %v1486_v1, %s1419_s27 }
  0x7c   : > { %437 = vrot.lane.b32.xlu1 %v1491_v2, %s1419_s27  ;;  %435 = vrot.lane.b32.xlu0 %v1483_v0, %s1419_s27 }
  0x80   : > { %441 = vrot.lane.b32.xlu1 %v1499_v4, %s1419_s27  ;;  %439 = vrot.lane.b32.xlu0 %v1502_v5, %s1419_s27 }
  0x84   : > { %445 = vrot.lane.b32.xlu1 %v1507_v6, %s1419_s27  ;;  %443 = vrot.lane.b32.xlu0 %v1510_v7, %s1419_s27 }
  0x88   : > { %449 = vrot.lane.b32.xlu1 %v1515_v8, %s1419_s27  ;;  %447 = vrot.lane.b32.xlu0 %v1518_v9, %s1419_s27 }
  0x8a   : > { %v1588_v17 = vpop.permute.xlu1 %243  ;;  %v1590_v18 = vpop.permute.xlu0 %239 }
  0x8c   : > { %453 = vrot.lane.b32.xlu1 %v1523_v10, %s1419_s27  ;;  %451 = vrot.lane.b32.xlu0 %v1526_v11, %s1419_s27 }
  0x8e   : > { %v1594_v19 = vpop.permute.xlu1 %245  ;;  %v1596_v20 = vpop.permute.xlu0 %241 }
  0x90   : > { %457 = vrot.lane.b32.xlu1 %v1531_v12, %s1419_s27  ;;  %455 = vrot.lane.b32.xlu0 %v1534_v13, %s1419_s27 }
  0x92   : > { %v1600_v21 = vpop.permute.xlu1 %249  ;;  %v1602_v22 = vpop.permute.xlu0 %247 }
  0x94   : > { %461 = vrot.lane.b32.xlu1 %v1539_v14, %s1419_s27  ;;  %459 = vrot.lane.b32.xlu0 %v1542_v15, %s1419_s27 }
  0x96   : > { %v1606_v23 = vpop.permute.xlu1 %253  ;;  %v1608_v24 = vpop.permute.xlu0 %251 }
  0x98   : > { %497 = vrot.lane.b32.xlu1 %v1494_v3, %s1420_s28  ;;  %495 = vrot.lane.b32.xlu0 %v1486_v1, %s1420_s28 }
  0x9a   : > { %v1612_v25 = vpop.permute.xlu1 %257  ;;  %v1614_v26 = vpop.permute.xlu0 %255 }
  0x9c   : > { %501 = vrot.lane.b32.xlu1 %v1491_v2, %s1420_s28  ;;  %499 = vrot.lane.b32.xlu0 %v1483_v0, %s1420_s28 }
  0x9e   : > { %v1618_v27 = vpop.permute.xlu1 %261  ;;  %v1620_v28 = vpop.permute.xlu0 %259 }
  0xa0   : > { %505 = vrot.lane.b32.xlu1 %v1499_v4, %s1420_s28  ;;  %503 = vrot.lane.b32.xlu0 %v1502_v5, %s1420_s28 }
  0xa2   : > { %v1624_v29 = vpop.permute.xlu1 %265  ;;  %v1626_v30 = vpop.permute.xlu0 %263 }
  0xa3   : > { %2111 = vst [vmem:[#allocation7_spill] sm:$0xff] %v1624_v29  ;;  %2112 = vst [vmem:[#allocation8_spill] sm:$0xff] %v1626_v30  ;;  %v708_v29 = vsel %vm707_vm1, %v689_v62, 1 }
  0xa4   : > { %509 = vrot.lane.b32.xlu1 %v1507_v6, %s1420_s28  ;;  %507 = vrot.lane.b32.xlu0 %v1510_v7, %s1420_s28 }
  0xa6   : > { %v1630_v31 = vpop.permute.xlu1 %269  ;;  %v1632_v32 = vpop.permute.xlu0 %267 }
  0xa8   : > { %513 = vrot.lane.b32.xlu1 %v1515_v8, %s1420_s28  ;;  %511 = vrot.lane.b32.xlu0 %v1518_v9, %s1420_s28 }
  0xaa   : > { %v1636_v33 = vpop.permute.xlu1 %305  ;;  %v1638_v34 = vpop.permute.xlu0 %303 }
  0xac   : > { %517 = vrot.lane.b32.xlu1 %v1523_v10, %s1420_s28  ;;  %515 = vrot.lane.b32.xlu0 %v1526_v11, %s1420_s28 }
  0xae   : > { %v1642_v35 = vpop.permute.xlu1 %309  ;;  %v1644_v36 = vpop.permute.xlu0 %307 }
  0xb0   : > { %521 = vrot.lane.b32.xlu1 %v1531_v12, %s1420_s28  ;;  %519 = vrot.lane.b32.xlu0 %v1534_v13, %s1420_s28 }
  0xb2   : > { %v1648_v37 = vpop.permute.xlu1 %313  ;;  %v1650_v38 = vpop.permute.xlu0 %311 }
  0xb4   : > { %525 = vrot.lane.b32.xlu1 %v1539_v14, %s1420_s28  ;;  %523 = vrot.lane.b32.xlu0 %v1542_v15, %s1420_s28 }
  0xb6   : > { %v1654_v39 = vpop.permute.xlu1 %317  ;;  %v1656_v40 = vpop.permute.xlu0 %315 }
  0xb8   : > { %561 = vrot.lane.b32.xlu1 %v1494_v3, %s1421_s29  ;;  %559 = vrot.lane.b32.xlu0 %v1486_v1, %s1421_s29 }
  0xba   : > { %v1660_v41 = vpop.permute.xlu1 %321  ;;  %v1662_v42 = vpop.permute.xlu0 %319 }
  0xbc   : > { %565 = vrot.lane.b32.xlu1 %v1491_v2, %s1421_s29  ;;  %563 = vrot.lane.b32.xlu0 %v1483_v0, %s1421_s29 }
  0xbe   : > { %v1666_v43 = vpop.permute.xlu1 %325  ;;  %v1668_v44 = vpop.permute.xlu0 %323 }
  0xbf   : > { %2113 = vst [vmem:[#allocation9_spill] sm:$0xff] %v1666_v43  ;;  %2114 = vst [vmem:[#allocation10_spill] sm:$0xff] %v1668_v44 }
  0xc0   : > { %569 = vrot.lane.b32.xlu1 %v1499_v4, %s1421_s29  ;;  %567 = vrot.lane.b32.xlu0 %v1502_v5, %s1421_s29 }
  0xc2   : > { %v1672_v45 = vpop.permute.xlu1 %329  ;;  %v1674_v46 = vpop.permute.xlu0 %327 }
  0xc3   : > { %2115 = vst [vmem:[#allocation11_spill] sm:$0xff] %v1672_v45  ;;  %2116 = vst [vmem:[#allocation12_spill] sm:$0xff] %v1674_v46  ;;  %v691_v46 = vld [vmem:[%s1711_s5 + $0x20] sm:$0xff]  ;;  %v704_v45 = vsel %vm703_vm0, %v687_v59, 1  ;;  %vm863_vm0 = vcmask 31744  }
  0xc4   : > { %573 = vrot.lane.b32.xlu1 %v1507_v6, %s1421_s29  ;;  %571 = vrot.lane.b32.xlu0 %v1510_v7, %s1421_s29  ;;  %vm711_vm4 = vcmp.gt.s32.totalorder %v691_v46, 1  ;;  %v735_v59 = vcvt.s32.f32 %v704_v45 }
  0xc6   : > { %v334_v47 = vpop.permute.xlu1 %333  ;;  %v332_v48 = vpop.permute.xlu0 %331 }
  0xc8   : > { %577 = vrot.lane.b32.xlu1 %v1515_v8, %s1421_s29  ;;  %575 = vrot.lane.b32.xlu0 %v1518_v9, %s1421_s29 }
  0xca   : > { %v1680_v49 = vpop.permute.xlu1 %369  ;;  %v1682_v50 = vpop.permute.xlu0 %367 }
  0xcc   : > { %581 = vrot.lane.b32.xlu1 %v1523_v10, %s1421_s29  ;;  %579 = vrot.lane.b32.xlu0 %v1526_v11, %s1421_s29 }
  0xce   : > { %v1686_v51 = vpop.permute.xlu1 %373  ;;  %v1688_v52 = vpop.permute.xlu0 %371 }
  0xd0   : > { %585 = vrot.lane.b32.xlu1 %v1531_v12, %s1421_s29  ;;  %583 = vrot.lane.b32.xlu0 %v1534_v13, %s1421_s29  ;;  %v301_v13 = vadd.f32 %v1632_v32, %v1542_v15  ;;  %v692_v32 = vld [vmem:[%s1711_s5 + $0x28] sm:$0xff] }
  0xd1   : > { %vm713_vm5 = vcmp.gt.s32.totalorder %v692_v32, 1 }
  0xd2   : > { %v1692_v53 = vpop.permute.xlu1 %377  ;;  %v1694_v54 = vpop.permute.xlu0 %375  ;;  %v365_v12 = vadd.f32 %v332_v48, %v301_v13 }
  0xd4   : > { %589 = vrot.lane.b32.xlu1 %v1539_v14, %s1421_s29  ;;  %587 = vrot.lane.b32.xlu0 %v1542_v15, %s1421_s29  ;;  %v693_v15 = vld [vmem:[%s1711_s5 + $0x30] sm:$0xff] }
  0xd5   : > { %vm715_vm6 = vcmp.gt.s32.totalorder %v693_v15, 1 }
  0xd6   : > { %v1698_v55 = vpop.permute.xlu1 %381  ;;  %v1700_v56 = vpop.permute.xlu0 %379 }
  0xd8   : > { %625 = vrot.lane.b32.xlu1 %v1494_v3, %s1422_s30  ;;  %623 = vrot.lane.b32.xlu0 %v1486_v1, %s1422_s30 }
  0xda   : > { %v1713_v57 = vpop.permute.xlu1 %385  ;;  %v1715_v58 = vpop.permute.xlu0 %383 }
  0xdb   : > { %2117 = vst [vmem:[#allocation13_spill] sm:$0xff] %v1713_v57  ;;  %2118 = vst [vmem:[#allocation14_spill] sm:$0xff] %v1715_v58  ;;  %v710_v58 = vsel %vm709_vm3, %v690_v16, 1  ;;  %v712_v57 = vsel %vm711_vm4, %v691_v46, 1 }
  0xdc   : > { %629 = vrot.lane.b32.xlu1 %v1491_v2, %s1422_s30  ;;  %627 = vrot.lane.b32.xlu0 %v1483_v0, %s1422_s30 }
  0xde   : > { %v1722_v60 = vpop.permute.xlu1 %389  ;;  %v1724_v61 = vpop.permute.xlu0 %387 }
  0xdf   : > { %2119 = vst [vmem:[#allocation15_spill] sm:$0xff] %v1722_v60  ;;  %2120 = vst [vmem:[#allocation16_spill] sm:$0xff] %v1724_v61  ;;  %v302_v61 = vadd.f32 %v1630_v31, %v1539_v14  ;;  %v288_v31 = vadd.f32 %v1596_v20, %v1494_v3  ;;  %v737_v3 = vcvt.s32.f32 %v708_v29  ;;  %v290_v20 = vadd.f32 %v1594_v19, %v1491_v2  ;;  %v697_v2 = vld [vmem:[%s1711_s5 + $0x50] sm:$0xff] }
  0xe0   : > { %633 = vrot.lane.b32.xlu1 %v1499_v4, %s1422_s30  ;;  %631 = vrot.lane.b32.xlu0 %v1502_v5, %s1422_s30  ;;  %v738_v29 = vcvt.s32.f32 %v710_v58  ;;  %v714_v19 = vsel %vm713_vm5, %v692_v32, 1  ;;  %vm723_vm10 = vcmp.gt.s32.totalorder %v697_v2, 1  ;;  %v699_v32 = vld [vmem:[%s1711_s5 + $0x60] sm:$0xff] }
  0xe1   : > { %v366_v14 = vadd.f32 %v334_v47, %v302_v61  ;;  %v352_v45 = vadd.f32 %v1636_v33, %v288_v31  ;;  %v694_v33 = vld [vmem:[%s1711_s5 + $0x38] sm:$0xff]  ;;  %v354_v46 = vadd.f32 %v1642_v35, %v290_v20  ;;  %v291_v35 = vadd.f32 %v1602_v22, %v1502_v5 }
  0xe2   : > { %v1734_v30 = vpop.permute.xlu1 %393  ;;  %v1736_v60 = vpop.permute.xlu0 %391  ;;  %vm717_vm7 = vcmp.gt.s32.totalorder %v694_v33, 1  ;;  %v740_v5 = vcvt.s32.f32 %v714_v19  ;;  %v698_v31 = vld [vmem:[%s1711_s5 + $0x58] sm:$0xff]  ;;  %vm727_vm12 = vcmp.gt.s32.totalorder %v699_v32, 1  ;;  %v295_v20 = vadd.f32 %v1614_v26, %v1518_v9 }
  0xe3   : > { %2121 = vst [vmem:[#allocation17_spill] sm:$0xff] %v1734_v30  ;;  %2122 = vst [vmem:[#allocation18_spill] sm:$0xff] %v1736_v60  ;;  %v706_v30 = vsel %vm705_vm2, %v688_v63, 1  ;;  %v287_v60 = vadd.f32 %v1590_v18, %v1486_v1  ;;  %v289_v18 = vadd.f32 %v1588_v17, %v1483_v0  ;;  %v696_v17 = vld [vmem:[%s1711_s5 + $0x48] sm:$0xff]  ;;  %v355_v61 = vadd.f32 %v1650_v38, %v291_v35  ;;  %v2126_v35 = vld [vmem:[#allocation10_spill] sm:$0xff] }
  0xe4   : > { %637 = vrot.lane.b32.xlu1 %v1507_v6, %s1422_s30  ;;  %635 = vrot.lane.b32.xlu0 %v1510_v7, %s1422_s30  ;;  %v736_v13 = vcvt.s32.f32 %v706_v30  ;;  %v739_v30 = vcvt.s32.f32 %v712_v57  ;;  %vm721_vm9 = vcmp.gt.s32.totalorder %v696_v17, 1  ;;  %v718_v22 = vsel %vm717_vm7, %v694_v33, 1 }
  0xe5   : > { %v351_v62 = vadd.f32 %v1638_v34, %v287_v60  ;;  %v695_v34 = vld [vmem:[%s1711_s5 + $0x40] sm:$0xff]  ;;  %v353_v47 = vadd.f32 %v1644_v36, %v289_v18  ;;  %v418_v36 = vadd.f32 %v1686_v51, %v354_v46  ;;  %vm725_vm11 = vcmp.gt.s32.totalorder %v698_v31, 1 }
  0xe6   : > { %v398_v44 = vpop.permute.xlu1 %397  ;;  %v396_v43 = vpop.permute.xlu0 %395  ;;  %vm719_vm8 = vcmp.gt.s32.totalorder %v695_v34, 1  ;;  %v728_v26 = vsel %vm727_vm12, %v699_v32, 1 }
  0xe7   : > { %v1754_v63 = vadd.f32 %v398_v44, %v366_v14  ;;  %v1756_v1 = vadd.f32 %v396_v43, %v365_v12  ;;  %v416_v14 = vadd.f32 %v1680_v49, %v352_v45  ;;  %v415_v12 = vadd.f32 %v1682_v50, %v351_v62 }
  0xe8   : > { %753 = vperm.xlu1 %1293, %v735_v59   ;;  %639 = vrot.lane.b32.xlu0 %v1518_v9, %s1422_s30  ;;  %v716_v49 = vsel %vm715_vm6, %v693_v15, 1  ;;  %v292_v50 = vadd.f32 %v1600_v21, %v1499_v4  ;;  %v417_v57 = vadd.f32 %v1688_v52, %v353_v47  ;;  %v720_v51 = vsel %vm719_vm8, %v695_v34, 1  ;;  %v2124_v47 = vld [vmem:[#allocation14_spill] sm:$0xff] }
  0xe9   : > { %v741_v21 = vcvt.s32.f32 %v716_v49  ;;  %v294_v52 = vadd.f32 %v1606_v23, %v1507_v6  ;;  %v419_v59 = vadd.f32 %v1694_v54, %v355_v61  ;;  %v296_v54 = vadd.f32 %v1612_v25, %v1515_v8  ;;  %v2125_v49 = vld [vmem:[#allocation9_spill] sm:$0xff] }
  0xea   : > { %v434_v43 = vpop.permute.xlu1 %433  ;;  %v432_v44 = vpop.permute.xlu0 %431  ;;  %v356_v15 = vadd.f32 %v1648_v37, %v292_v50  ;;  %v293_v37 = vadd.f32 %v1608_v24, %v1510_v7  ;;  %v742_v24 = vcvt.s32.f32 %v718_v22  ;;  %v726_v9 = vsel %vm725_vm11, %v698_v31, 1  ;;  %v2132_v31 = vld [vmem:[#allocation16_spill] sm:$0xff] }
  0xeb   : > { %v1770_v48 = vadd.f32 %v434_v43, %v416_v14  ;;  %v1772_v0 = vadd.f32 %v432_v44, %v415_v12  ;;  %v358_v18 = vadd.f32 %v1654_v39, %v294_v52  ;;  %v700_v14 = vld [vmem:[%s1711_s5 + $0x68] sm:$0xff]  ;;  %v701_v12 = vld [vmem:[%s1711_s5 + $0x70] sm:$0xff] }
  0xec   : > { %763 = vperm.xlu1 %1293, %v737_v3   ;;  %758 = vperm.xlu0 %1294, %v736_v13   ;;  %v420_v38 = vadd.f32 %v1692_v53, %v356_v15  ;;  %v722_v3 = vsel %vm721_vm9, %v696_v17, 1  ;;  %v724_v13 = vsel %vm723_vm10, %v697_v2, 1  ;;  %v357_v6 = vadd.f32 %v1656_v40, %v293_v37  ;;  %v2130_v52 = vld [vmem:[#allocation8_spill] sm:$0xff] }
  0xed   : > { %v743_v53 = vcvt.s32.f32 %v720_v51  ;;  %v422_v39 = vadd.f32 %v1698_v55, %v358_v18  ;;  %v744_v43 = vcvt.s32.f32 %v722_v3  ;;  %v745_v44 = vcvt.s32.f32 %v724_v13  ;;  %v2129_v51 = vld [vmem:[#allocation4_spill] sm:$0xff]  ;;  %v2133_v3 = vld [vmem:[#allocation11_spill] sm:$0xff] }
  0xee   : > { %v438_v58 = vpop.permute.xlu1 %437  ;;  %v436_v60 = vpop.permute.xlu0 %435  ;;  %v421_v40 = vadd.f32 %v1700_v56, %v357_v6  ;;  %vm729_vm13 = vcmp.gt.s32.totalorder %v700_v14, 1  ;;  %vm731_vm14 = vcmp.gt.s32.totalorder %v701_v12, 1  ;;  %v298_v55 = vadd.f32 %v1618_v27, %v1523_v10  ;;  %v2134_v18 = vld [vmem:[#allocation12_spill] sm:$0xff] }
  0xef   : > { %v1786_v16 = vadd.f32 %v438_v58, %v418_v36  ;;  %v1788_v4 = vadd.f32 %v436_v60, %v417_v57  ;;  %v702_v60 = vld [vmem:[%s1711_s5 + $0x78] sm:$0xff]  ;;  %v746_v27 = vcvt.s32.f32 %v726_v9  ;;  %v747_v15 = vcvt.s32.f32 %v728_v26 }
  0xf0   : > { %768 = vperm.xlu1 %1293, %v738_v29   ;;  %773 = vperm.xlu0 %1294, %v739_v30   ;;  %v360_v29 = vadd.f32 %v1660_v41, %v296_v54  ;;  %v359_v30 = vadd.f32 %v1662_v42, %v295_v20  ;;  %v297_v41 = vadd.f32 %v1620_v28, %v1526_v11  ;;  %v2123_v42 = vld [vmem:[#allocation13_spill] sm:$0xff]  ;;  %v730_v28 = vsel %vm729_vm13, %v700_v14, 1  ;;  %v2136_v14 = vld [vmem:[#allocation18_spill] sm:$0xff] }
  0xf1   : > { %v362_v50 = vadd.f32 %v2125_v49, %v298_v55  ;;  %v732_v61 = vsel %vm731_vm14, %v701_v12, 1  ;;  %v299_v37 = vadd.f32 %v2130_v52, %v2129_v51  ;;  %vm733_vm15 = vcmp.gt.s32.totalorder %v702_v60, 1 }
  0xf2   : > { %v442_v45 = vpop.permute.xlu1 %441  ;;  %v440_v62 = vpop.permute.xlu0 %439  ;;  %v424_v56 = vadd.f32 %v2123_v42, %v360_v29  ;;  %v423_v17 = vadd.f32 %v2124_v47, %v359_v30  ;;  %v361_v36 = vadd.f32 %v2126_v35, %v297_v41  ;;  %v748_v54 = vcvt.s32.f32 %v730_v28 }
  0xf3   : > { %v1804_v23 = vadd.f32 %v442_v45, %v420_v38  ;;  %v1806_v7 = vadd.f32 %v440_v62, %v419_v59  ;;  %v2131_v38 = vld [vmem:[#allocation15_spill] sm:$0xff]  ;;  %v363_v6 = vadd.f32 %v2134_v18, %v299_v37  ;;  %v749_v20 = vcvt.s32.f32 %v732_v61 }
  0xf4   : > { %778 = vperm.xlu1 %1293, %v740_v5   ;;  %783 = vperm.xlu0 %1294, %v741_v21   ;;  %v2127_v5 = vld [vmem:[#allocation3_spill] sm:$0xff]  ;;  %v426_v59 = vadd.f32 %v2131_v38, %v362_v50  ;;  %v425_v32 = vadd.f32 %v2132_v31, %v361_v36 }
  0xf5   : > { %v2128_v21 = vld [vmem:[#allocation7_spill] sm:$0xff]  ;;  %v427_v12 = vadd.f32 %v2136_v14, %v363_v6 }
  0xf6   : > { %v446_v33 = vpop.permute.xlu1 %445  ;;  %v444_v34 = vpop.permute.xlu0 %443  ;;  %v300_v22 = vadd.f32 %v2128_v21, %v2127_v5 }
  0xf7   : > { %v1818_v46 = vadd.f32 %v446_v33, %v422_v39  ;;  %v1820_v25 = vadd.f32 %v444_v34, %v421_v40  ;;  %v2135_v39 = vld [vmem:[#allocation17_spill] sm:$0xff]  ;;  %v734_v33 = vsel %vm733_vm15, %v702_v60, 1 }
  0xf8   : > { %788 = vperm.xlu1 %1293, %v742_v24   ;;  %793 = vperm.xlu0 %1294, %v743_v53   ;;  %v364_v13 = vadd.f32 %v2133_v3, %v300_v22  ;;  %v750_v30 = vcvt.s32.f32 %v734_v33 }
  0xfa   : > { %v450_v2 = vpop.permute.xlu1 %449  ;;  %v448_v19 = vpop.permute.xlu0 %447  ;;  %v428_v40 = vadd.f32 %v2135_v39, %v364_v13 }
  0xfb   : > { %v1832_v57 = vadd.f32 %v450_v2, %v424_v56  ;;  %v1834_v58 = vadd.f32 %v448_v19, %v423_v17 }
  0xfc   : > { %798 = vperm.xlu1 %1293, %v744_v43   ;;  %803 = vperm.xlu0 %1294, %v745_v44  }
  0xfe   : > { %v454_v45 = vpop.permute.xlu1 %453  ;;  %v452_v62 = vpop.permute.xlu0 %451 }
  0xff   : > { %v490_v24 = vadd.f32 %v454_v45, %v426_v59  ;;  %v489_v53 = vadd.f32 %v452_v62, %v425_v32 }
 0x100   : > { %808 = vperm.xlu1 %1293, %v746_v27   ;;  %813 = vperm.xlu0 %1294, %v747_v15  }
 0x102   : > { %v458_v34 = vpop.permute.xlu1 %457  ;;  %v456_v43 = vpop.permute.xlu0 %455 }
 0x103   : > { %v492_v44 = vadd.f32 %v458_v34, %v428_v40  ;;  %v491_v29 = vadd.f32 %v456_v43, %v427_v12 }
 0x104   : > { %818 = vperm.xlu1 %1293, %v748_v54   ;;  %823 = vperm.xlu0 %1294, %v749_v20  }
 0x106   : > { %v462_v9 = vpop.permute.xlu1 %461  ;;  %v460_v26 = vpop.permute.xlu0 %459 }
 0x107   : > { %v494_v55 = vadd.f32 %v462_v9, %v1754_v63  ;;  %v493_v41 = vadd.f32 %v460_v26, %v1756_v1 }
 0x108   : > { %828 = vperm.xlu1 %1293, %v750_v30   ;;  %641 = vrot.lane.b32.xlu0 %v1515_v8, %s1422_s30 }
 0x10a   : > { %v498_v42 = vpop.permute.xlu1 %497  ;;  %v496_v56 = vpop.permute.xlu0 %495 }
 0x10b   : > { %v1854_v47 = vadd.f32 %v498_v42, %v1770_v48  ;;  %v1857_v17 = vadd.f32 %v496_v56, %v1772_v0 }
 0x10c   : > { %643 = vrot.lane.b32.xlu1 %v1526_v11, %s1422_s30  ;;  %645 = vrot.lane.b32.xlu0 %v1523_v10, %s1422_s30 }
 0x10e   : > { %v502_v63 = vpop.permute.xlu1 %501  ;;  %v500_v1 = vpop.permute.xlu0 %499 }
 0x10f   : > { %v1864_v2 = vadd.f32 %v502_v63, %v1786_v16  ;;  %v1867_v8 = vadd.f32 %v500_v1, %v1788_v4  ;;  %v2137_v16 = vld [vmem:[#allocation6_spill] sm:$0xff]  ;;  %v2138_v4 = vld [vmem:[#allocation5_spill] sm:$0xff] }
 0x110   : > { %647 = vrot.lane.b32.xlu1 %v2129_v51, %s1422_s30  ;;  %649 = vrot.lane.b32.xlu0 %v2127_v5, %s1422_s30 }
 0x112   : > { %v506_v48 = vpop.permute.xlu1 %505  ;;  %v504_v0 = vpop.permute.xlu0 %503 }
 0x113   : > { %v1874_v11 = vadd.f32 %v506_v48, %v1804_v23  ;;  %v1877_v10 = vadd.f32 %v504_v0, %v1806_v7 }
 0x114   : > { %651 = vrot.lane.b32.xlu1 %v2137_v16, %s1422_s30  ;;  %653 = vrot.lane.b32.xlu0 %v2138_v4, %s1422_s30 }
 0x116   : > { %v510_v19 = vpop.permute.xlu1 %509  ;;  %v508_v49 = vpop.permute.xlu0 %507 }
 0x117   : > { %v1884_v50 = vadd.f32 %v510_v19, %v1818_v46  ;;  %v1887_v35 = vadd.f32 %v508_v49, %v1820_v25 }
 0x11a   : > { %v514_v36 = vpop.permute.xlu1 %513  ;;  %v512_v23 = vpop.permute.xlu0 %511 }
 0x11b   : > { %v1890_v60 = vadd.f32 %v514_v36, %v1832_v57  ;;  %v1893_v7 = vadd.f32 %v512_v23, %v1834_v58 }
 0x11e   : > { %v518_v27 = vpop.permute.xlu1 %517  ;;  %v516_v15 = vpop.permute.xlu0 %515 }
 0x11f   : > { %v1895_v28 = vadd.f32 %v518_v27, %v490_v24  ;;  %v1897_v61 = vadd.f32 %v516_v15, %v489_v53 }
 0x122   : > { %v522_v5 = vpop.permute.xlu1 %521  ;;  %v520_v46 = vpop.permute.xlu0 %519 }
 0x123   : > { %v1899_v21 = vadd.f32 %v522_v5, %v492_v44  ;;  %v1901_v25 = vadd.f32 %v520_v46, %v491_v29 }
 0x126   : > { %v526_v22 = vpop.permute.xlu1 %525  ;;  %v524_v51 = vpop.permute.xlu0 %523 }
 0x127   : > { %v1903_v52 = vadd.f32 %v526_v22, %v494_v55  ;;  %v1905_v57 = vadd.f32 %v524_v51, %v493_v41 }
 0x12a   : > { %v562_v58 = vpop.permute.xlu1 %561  ;;  %v560_v37 = vpop.permute.xlu0 %559 }
 0x12b   : > { %v607_v42 = vadd.f32 %v560_v37, %v1857_v17  ;;  %v608_v4 = vadd.f32 %v562_v58, %v1854_v47 }
 0x12e   : > { %v566_v38 = vpop.permute.xlu1 %565  ;;  %v564_v59 = vpop.permute.xlu0 %563 }
 0x12f   : > { %v609_v0 = vadd.f32 %v564_v59, %v1867_v8  ;;  %v610_v8 = vadd.f32 %v566_v38, %v1864_v2 }
 0x132   : > { %v1907_v31 = vpop.permute.xlu1 %569  ;;  %v568_v32 = vpop.permute.xlu0 %567 }
 0x133   : > { %v611_v47 = vadd.f32 %v568_v32, %v1877_v10  ;;  %v612_v2 = vadd.f32 %v1907_v31, %v1874_v11 }
 0x136   : > { %v1909_v45 = vpop.permute.xlu1 %573  ;;  %v1911_v62 = vpop.permute.xlu0 %571 }
 0x137   : > { %v613_v10 = vadd.f32 %v1911_v62, %v1887_v35  ;;  %v614_v11 = vadd.f32 %v1909_v45, %v1884_v50 }
 0x13a   : > { %v1913_v3 = vpop.permute.xlu1 %577  ;;  %v1915_v13 = vpop.permute.xlu0 %575 }
 0x13b   : > { %v615_v35 = vadd.f32 %v1915_v13, %v1893_v7  ;;  %v616_v7 = vadd.f32 %v1913_v3, %v1890_v60 }
 0x13e   : > { %v1917_v18 = vpop.permute.xlu1 %581  ;;  %v1919_v6 = vpop.permute.xlu0 %579 }
 0x142   : > { %v1921_v24 = vpop.permute.xlu1 %585  ;;  %v1923_v53 = vpop.permute.xlu0 %583 }
 0x146   : > { %v1925_v54 = vpop.permute.xlu0 %587  ;;  %v1927_v20 = vpop.permute.xlu1 %589 }
 0x14a   : > { %v624_v39 = vpop.permute.xlu0 %623  ;;  %v626_v40 = vpop.permute.xlu1 %625 }
 0x14b   : > { %v671_v1 = vadd.f32 %v624_v39, %v607_v42  ;;  %v672_v23 = vadd.f32 %v626_v40, %v608_v4 }
 0x14e   : > { %v628_v14 = vpop.permute.xlu0 %627  ;;  %v630_v12 = vpop.permute.xlu1 %629 }
 0x14f   : > { %v673_v36 = vadd.f32 %v628_v14, %v609_v0  ;;  %v674_v51 = vadd.f32 %v630_v12, %v610_v8 }
 0x152   : > { %v632_v33 = vpop.permute.xlu0 %631  ;;  %v634_v34 = vpop.permute.xlu1 %633 }
 0x153   : > { %v675_v37 = vadd.f32 %v632_v33, %v611_v47  ;;  %v676_v14 = vadd.f32 %v634_v34, %v612_v2 }
 0x156   : > { %v636_v43 = vpop.permute.xlu0 %635  ;;  %v1929_v44 = vpop.permute.xlu1 %637 }
 0x157   : > { %v677_v33 = vadd.f32 %v636_v43, %v613_v10 }
 0x15a   : > { %v1931_v29 = vpop.permute.xlu0 %639 }
 0x163   : > { %v754_v30 = vpop.permute.xlu1 %753 }
 0x164   : > { %1295 = vrcp.f32 %v754_v30 }
 0x167   : > { %v764_v9 = vpop.permute.xlu1 %763  ;;  %v759_v26 = vpop.permute.xlu0 %758 }
 0x168   : > { %1297 = vrcp.f32 %v764_v9 }
 0x169   : > { %1299 = vrcp.f32 %v759_v26  ;;  %v678_v26 = vadd.f32 %v1929_v44, %v614_v11 }
 0x16b   : > { %v769_v55 = vpop.permute.xlu1 %768  ;;  %v774_v41 = vpop.permute.xlu0 %773 }
 0x16c   : > { %1301 = vrcp.f32 %v769_v55  ;;  %v679_v55 = vadd.f32 %v1931_v29, %v615_v35  ;;  %v618_v29 = vadd.f32 %v1917_v18, %v1895_v28  ;;  %v619_v28 = vadd.f32 %v1923_v53, %v1901_v25 }
 0x16d   : > { %1303 = vrcp.f32 %v774_v41  ;;  %v621_v25 = vadd.f32 %v1925_v54, %v1905_v57 }
 0x16f   : > { %v779_v56 = vpop.permute.xlu1 %778  ;;  %v784_v63 = vpop.permute.xlu0 %783 }
 0x170   : > { %1305 = vrcp.f32 %v779_v56 }
 0x171   : > { %v1296_v48 = vpop.eup %1295  ;;  %1307 = vrcp.f32 %v784_v63  ;;  %v617_v63 = vadd.f32 %v1919_v6, %v1897_v61 }
 0x172   : > { %v832_v16 = vmul.f32 %v1296_v48, %v671_v1 }
 0x173   : > { %v789_v19 = vpop.permute.xlu1 %788  ;;  %v794_v49 = vpop.permute.xlu0 %793 }
 0x174   : > { %864 = vst.msk [vmem:[%s1937_s8] sm:$0xff] %vm863_vm0, %v832_v16  ;;  %1309 = vrcp.f32 %v789_v19  ;;  %v620_v19 = vadd.f32 %v1921_v24, %v1899_v21  ;;  %v622_v21 = vadd.f32 %v1927_v20, %v1903_v52 }
 0x175   : > { %v1298_v17 = vpop.eup %1297  ;;  %1311 = vrcp.f32 %v794_v49 }
 0x176   : > { %v1300_v27 = vpop.eup %1299  ;;  %v836_v15 = vmul.f32 %v1298_v17, %v673_v36 }
 0x177   : > { %v834_v5 = vmul.f32 %v1300_v27, %v672_v23  ;;  %v799_v46 = vpop.permute.xlu1 %798  ;;  %v804_v22 = vpop.permute.xlu0 %803 }
 0x178   : > { %866 = vst.msk [vmem:[%s1937_s8 + $0x10] sm:$0xff] %vm863_vm0, %v836_v15  ;;  %1313 = vrcp.f32 %v799_v46 }
 0x179   : > { %v1302_v58 = vpop.eup %1301  ;;  %865 = vst.msk [vmem:[%s1937_s8 + $0x8] sm:$0xff] %vm863_vm0, %v834_v5  ;;  %1315 = vrcp.f32 %v804_v22 }
 0x17a   : > { %v1304_v59 = vpop.eup %1303  ;;  %v838_v38 = vmul.f32 %v1302_v58, %v674_v51 }
 0x17b   : > { %v840_v32 = vmul.f32 %v1304_v59, %v675_v37  ;;  %v809_v39 = vpop.permute.xlu1 %808  ;;  %v814_v40 = vpop.permute.xlu0 %813 }
 0x17c   : > { %867 = vst.msk [vmem:[%s1937_s8 + $0x18] sm:$0xff] %vm863_vm0, %v838_v38  ;;  %1317 = vrcp.f32 %v809_v39 }
 0x17d   : > { %v1306_v12 = vpop.eup %1305  ;;  %868 = vst.msk [vmem:[%s1937_s8 + $0x20] sm:$0xff] %vm863_vm0, %v840_v32  ;;  %1319 = vrcp.f32 %v814_v40 }
 0x17e   : > { %v1308_v30 = vpop.eup %1307  ;;  %v842_v31 = vmul.f32 %v1306_v12, %v676_v14 }
 0x17f   : > { %v844_v62 = vmul.f32 %v1308_v30, %v677_v33  ;;  %v819_v34 = vpop.permute.xlu1 %818  ;;  %v824_v9 = vpop.permute.xlu0 %823 }
 0x180   : > { %869 = vst.msk [vmem:[%s1937_s8 + $0x28] sm:$0xff] %vm863_vm0, %v842_v31  ;;  %1321 = vrcp.f32 %v819_v34 }
 0x181   : > { %v1310_v43 = vpop.eup %1309  ;;  %870 = vst.msk [vmem:[%s1937_s8 + $0x30] sm:$0xff] %vm863_vm0, %v844_v62  ;;  %1323 = vrcp.f32 %v824_v9 }
 0x182   : > { %v1312_v50 = vpop.eup %1311  ;;  %v846_v45 = vmul.f32 %v1310_v43, %v678_v26 }
 0x183   : > { %v848_v13 = vmul.f32 %v1312_v50, %v679_v55  ;;  %v829_v41 = vpop.permute.xlu1 %828  ;;  %v642_v42 = vpop.permute.xlu0 %641 }
 0x184   : > { %871 = vst.msk [vmem:[%s1937_s8 + $0x38] sm:$0xff] %vm863_vm0, %v846_v45  ;;  %1325 = vrcp.f32 %v829_v41  ;;  %v680_v44 = vadd.f32 %v642_v42, %v616_v7 }
 0x185   : > { %v1314_v56 = vpop.eup %1313  ;;  %872 = vst.msk [vmem:[%s1937_s8 + $0x40] sm:$0xff] %vm863_vm0, %v848_v13 }
 0x186   : > { %v850_v60 = vmul.f32 %v1314_v56, %v680_v44  ;;  %v1316_v48 = vpop.eup %1315 }
 0x187   : > { %v644_v3 = vpop.permute.xlu1 %643  ;;  %v646_v1 = vpop.permute.xlu0 %645 }
 0x188   : > { %873 = vst.msk [vmem:[%s1937_s8 + $0x48] sm:$0xff] %vm863_vm0, %v850_v60  ;;  %v681_v0 = vadd.f32 %v644_v3, %v617_v63  ;;  %v682_v16 = vadd.f32 %v646_v1, %v618_v29 }
 0x189   : > { %v1318_v4 = vpop.eup %1317 }
 0x18a   : > { %v852_v18 = vmul.f32 %v1316_v48, %v681_v0  ;;  %v854_v49 = vmul.f32 %v1318_v4, %v682_v16  ;;  %v1320_v36 = vpop.eup %1319 }
 0x18b   : > { %v648_v61 = vpop.permute.xlu1 %647  ;;  %v650_v6 = vpop.permute.xlu0 %649 }
 0x18c   : > { %874 = vst.msk [vmem:[%s1937_s8 + $0x50] sm:$0xff] %vm863_vm0, %v852_v18  ;;  %875 = vst.msk [vmem:[%s1937_s8 + $0x58] sm:$0xff] %vm863_vm0, %v854_v49  ;;  %v683_v17 = vadd.f32 %v648_v61, %v619_v28  ;;  %v684_v23 = vadd.f32 %v650_v6, %v620_v19 }
 0x18d   : > { %v1322_v27 = vpop.eup %1321 }
 0x18e   : > { %v856_v24 = vmul.f32 %v1320_v36, %v683_v17  ;;  %v858_v53 = vmul.f32 %v1322_v27, %v684_v23  ;;  %v1324_v47 = vpop.eup %1323 }
 0x18f   : > { %v652_v8 = vpop.permute.xlu1 %651  ;;  %v654_v15 = vpop.permute.xlu0 %653 }
 0x190   : > { %876 = vst.msk [vmem:[%s1937_s8 + $0x60] sm:$0xff] %vm863_vm0, %v856_v24  ;;  %877 = vst.msk [vmem:[%s1937_s8 + $0x68] sm:$0xff] %vm863_vm0, %v858_v53  ;;  %v685_v5 = vadd.f32 %v652_v8, %v621_v25  ;;  %v686_v46 = vadd.f32 %v654_v15, %v622_v21  ;;  %886 = sbr.rel (!%p1463_p4) target bundleno = 446 (0x1be), region = 32 }
 0x191   : > { %v1326_v22 = vpop.eup %1325 }
 0x192   : > { %v860_v51 = vmul.f32 %v1324_v47, %v685_v5  ;;  %v862_v58 = vmul.f32 %v1326_v22, %v686_v46 }
 0x194   : > { %878 = vst.msk [vmem:[%s1937_s8 + $0x70] sm:$0xff] %vm863_vm0, %v860_v51  ;;  %879 = vst.msk [vmem:[%s1937_s8 + $0x78] sm:$0xff] %vm863_vm0, %v862_v58 }
 0x195   : > { %s2146_s9 = smov (!%p889_p8, %s888_s9), 16 }
 0x196   : > { %s1179_s20 = sshll.u32 %s2146_s9, 7 }
 0x197   : > { %p1182_p9 = scmp.eq.s32.totalorder %s1179_s20, 0 }
 0x198   : > { %s2010_s21 = sshrl.u32 (!%p1182_p9), %s2146_s9, 4 }
 0x199   : > { %897 = sbr.rel (%p1182_p9) target bundleno = 446 (0x1be), region = 36  ;;  %p1183_p10 = scmp.le.s32.totalorder (!%p1182_p9), %s2010_s21, 0 }
 0x19e   : > { %1118 = sbr.rel (%p1183_p10) target bundleno = 429 (0x1ad), region = 115  ;;  %s2139_s12 = smov (!%p1183_p10), %s2004_s19 }
 0x19f   : > { %s2140_s17 = smov (!%p1183_p10), %s1937_s8  ;;  %s2019_s18 = smov (!%p1183_p10), 0  }
 0x1a0   : > { %s2021_s22 = smov (!%p1183_p10), 0  }
 0x1a3 LB: >> { %v990_v52 = vld [vmem:[%s1389_s17] sm:$0xff]  ;;  %v992_v57 = vld [vmem:[%s1389_s17 + $0x8] sm:$0xff]  ;;  %v994_v54 = vld [vmem:[%s1389_s17 + $0x10] sm:$0xff]  ;;  %s1022_s23 = sadd.s32 1, %s1393_s18  ;;  %s984_s22 = sadd.s32 1, %s1397_s22   ;;  %s1397_s22 = sphi %s2021_s22, %s984_s22   ;;  %s1393_s18 = sphi %s2019_s18, %s2141_s18   ;;  %s1389_s17 = sphi %s2140_s17, %s1027_s17   ;;  %s1385_s12 = sphi %s2139_s12, %s1028_s12  }
 0x1a4   : >> { %991 = vst [vmem:[%s1385_s12] sm:$0xff] %v990_v52  ;;  %993 = vst [vmem:[%s1385_s12 + $0x8] sm:$0xff] %v992_v57  ;;  %v996_v20 = vld [vmem:[%s1389_s17 + $0x18] sm:$0xff]  ;;  %v998_v37 = vld [vmem:[%s1389_s17 + $0x20] sm:$0xff]  ;;  %p1023_p11 = scmp.ge.s32.totalorder %s1022_s23, %s2010_s21  ;;  %p983_p12 = scmp.ge.s32.totalorder %s984_s22, %s2010_s21 }
 0x1a5   : >> { %995 = vst [vmem:[%s1385_s12 + $0x10] sm:$0xff] %v994_v54  ;;  %v1000_v59 = vld [vmem:[%s1389_s17 + $0x28] sm:$0xff]  ;;  %997 = vst [vmem:[%s1385_s12 + $0x18] sm:$0xff] %v996_v20  ;;  %v1002_v2 = vld [vmem:[%s1389_s17 + $0x30] sm:$0xff] }
 0x1a6   : >> { %999 = vst [vmem:[%s1385_s12 + $0x20] sm:$0xff] %v998_v37  ;;  %1001 = vst [vmem:[%s1385_s12 + $0x28] sm:$0xff] %v1000_v59  ;;  %v1004_v38 = vld [vmem:[%s1389_s17 + $0x38] sm:$0xff]  ;;  %v1006_v10 = vld [vmem:[%s1389_s17 + $0x40] sm:$0xff]  ;;  %s2148_s23 = smov (%p1023_p11, %s1022_s23), 0 }
 0x1a7   : >> { %1003 = vst [vmem:[%s1385_s12 + $0x30] sm:$0xff] %v1002_v2  ;;  %1005 = vst [vmem:[%s1385_s12 + $0x38] sm:$0xff] %v1004_v38  ;;  %v1008_v32 = vld [vmem:[%s1389_s17 + $0x48] sm:$0xff]  ;;  %v1010_v39 = vld [vmem:[%s1389_s17 + $0x50] sm:$0xff]  ;;  %s1184_s24 = sshll.u32 %s2148_s23, 7  ;;  %s2141_s18 = smov %s2148_s23 }
 0x1a8   : >> { %1007 = vst [vmem:[%s1385_s12 + $0x40] sm:$0xff] %v1006_v10  ;;  %v1012_v40 = vld [vmem:[%s1389_s17 + $0x58] sm:$0xff]  ;;  %1009 = vst [vmem:[%s1385_s12 + $0x48] sm:$0xff] %v1008_v32  ;;  %v1014_v14 = vld [vmem:[%s1389_s17 + $0x60] sm:$0xff]  ;;  %986 = sbr.rel (!%p983_p12) target bundleno = 419 (0x1a3), region = 121 }
 0x1a9   : >> { %1011 = vst [vmem:[%s1385_s12 + $0x50] sm:$0xff] %v1010_v39  ;;  %1013 = vst [vmem:[%s1385_s12 + $0x58] sm:$0xff] %v1012_v40  ;;  %v1016_v12 = vld [vmem:[%s1389_s17 + $0x68] sm:$0xff]  ;;  %v1018_v33 = vld [vmem:[%s1389_s17 + $0x70] sm:$0xff] }
 0x1aa   : >> { %1015 = vst [vmem:[%s1385_s12 + $0x60] sm:$0xff] %v1014_v14  ;;  %1017 = vst [vmem:[%s1385_s12 + $0x68] sm:$0xff] %v1016_v12  ;;  %v1020_v30 = vld [vmem:[%s1389_s17 + $0x78] sm:$0xff]  ;;  %s1027_s17 = scalar_lea.vmem %s1937_s8, %s1184_s24 [#allocation2]  }
 0x1ab   : >> { %1019 = vst [vmem:[%s1385_s12 + $0x70] sm:$0xff] %v1018_v33  ;;  %1021 = vst [vmem:[%s1385_s12 + $0x78] sm:$0xff] %v1020_v30  ;;  %s1028_s12 = scalar_lea.vmem %s2004_s19, %s1184_s24  }
 0x1ad PF: > { %s2079_s25 = sand.u32 15, %s2146_s9   ;;  %s1195_s26 = sshll.u32 %s2010_s21, 7 }
 0x1ae   : > { %s1033_s27 = scalar_lea.vmem %s1937_s8, %s1195_s26 [#allocation2]   ;;  %s1035_s28 = scalar_lea.vmem %s2004_s19, %s1195_s26  }
 0x1af   : > { %p1189_p13 = scmp.le.s32.totalorder %s2079_s25, 0 }
 0x1b0   : > { %s1399_s29 = smov (!%p1189_p13), %s1035_s28   ;;  %s1403_s30 = smov (!%p1189_p13), %s1033_s27  }
 0x1b1   : > { %1132 = sbr.rel (%p1189_p13) target bundleno = 446 (0x1be), region = 126  ;;  %s1407_s3 = smov (!%p1189_p13), 0  }
 0x1b2   : > { %s1411_s4 = smov (!%p1189_p13), 0  }
 0x1b6 LB: >> { %v1045_v11 = vld [vmem:[%s1405_s30] sm:$0xff]  ;;  %s1047_s5 = sadd.s32 1, %s1409_s3  ;;  %s1039_s4 = sadd.s32 1, %s1413_s4   ;;  %s1413_s4 = sphi %s1411_s4, %s1039_s4   ;;  %s1409_s3 = sphi %s1407_s3, %s1408_s3   ;;  %s1405_s30 = sphi %s1403_s30, %s1052_s30   ;;  %s1401_s29 = sphi %s1399_s29, %s1053_s29  }
 0x1b7   : >> { %1046 = vst [vmem:[%s1401_s29] sm:$0xff] %v1045_v11  ;;  %p1048_p0 = scmp.ge.s32.totalorder %s1047_s5, %s2079_s25  ;;  %p1038_p1 = scmp.ge.s32.totalorder %s1039_s4, %s2079_s25 }
 0x1b9   : >> { %s2150_s5 = smov (%p1048_p0, %s1047_s5), 0  ;;  %1041 = sbr.rel (!%p1038_p1) target bundleno = 438 (0x1b6), region = 132 }
 0x1ba   : >> { %s1190_s6 = sshll.u32 %s2150_s5, 3  ;;  %s1408_s3 = smov %s2150_s5  }
 0x1bb   : >> { %s1052_s30 = scalar_lea.vmem %s1033_s27, %s1190_s6 [#allocation2]   ;;  %s1053_s29 = scalar_lea.vmem %s1035_s28, %s1190_s6  }
 0x1be PF: > { %p9_p2 = scmp.ge.s32.totalorder %s1453_s13, 5   ;;  %s2142_s9 = smov %s1377_s10 }
 0x1bf   : > { %s2143_s10 = smov %s1461_s16  ;;  %s2144_s11 = smov %s1453_s13 }
 0x1c0   :  { %11 = sbr.rel (!%p9_p2) target bundleno = 2 (0x2), region = 143 }

</bundles_post_ra>
